<compile_context>
chip_gen: v7x
topology: tpu7x:2x2x1
jax: 0.10.0
libtpu: 0.0.40
codegen_flags: <defaults>
</compile_context>

<pallas_src>
import functools

import jax
import jax.numpy as jnp
from jax.experimental import pallas as pl
from jax.experimental.pallas import tpu as pltpu

WINDOW = 5            # window_size
PAD = WINDOW // 2
NPOSE = 6             # pose / velocity channels


def _action_kernel(af_ref, pose_ref, w1_ref, b1_ref, w2_ref, b2_ref,
                   cw_ref, cb_ref, out_ref, pose_scr, vel_scr, *, seq_len):
    # af_ref:   (R, H)  bf16   (R = batch_chunk * T rows, batch-major)
    # pose_ref: (R, 6)  f32
    # out_ref:  (3, R, 6) f32  -> [smooth | velocity | acceleration] planes
    R = pose_ref.shape[0]

    # ---- velocity head: Linear -> ReLU -> Linear (bf16 MXU, f32 accumulate) ----
    hidden = jnp.dot(af_ref[...], w1_ref[...],
                     preferred_element_type=jnp.float32) + b1_ref[...]
    hidden = jnp.maximum(hidden, 0.0)
    vel = jnp.dot(hidden.astype(jnp.bfloat16), w2_ref[...],
                  preferred_element_type=jnp.float32) + b2_ref[...]      # (R, 6)

    # per-row time index inside its batch element (rows are batch-major)
    t = jax.lax.broadcasted_iota(jnp.int32, (R, NPOSE), 0) % seq_len

    # ---- accelerations: acc[t] = vel[t] - vel[t-1], acc[0] = 0 per batch ----
    vel_scr[0:PAD, :] = jnp.zeros((PAD, NPOSE), jnp.float32)
    vel_scr[PAD:PAD + R, :] = vel
    vel_prev = vel_scr[...][PAD - 1:PAD - 1 + R, :]                      # vel[r-1]
    acc = jnp.where(t > 0, vel - vel_prev, 0.0)

    # ---- depthwise temporal smoothing conv ('same' zero padding per batch) ----
    pose_scr[0:PAD, :] = jnp.zeros((PAD, NPOSE), jnp.float32)
    pose_scr[PAD + R:PAD + R + PAD, :] = jnp.zeros((PAD, NPOSE), jnp.float32)
    pose_scr[PAD:PAD + R, :] = pose_ref[...]
    padded = pose_scr[...]                                               # (R+2*PAD, 6)
    cw = cw_ref[...]                                                     # (WINDOW, 6)
    sm = jnp.broadcast_to(cb_ref[...], (R, NPOSE))                       # hoisted bias
    for k in range(WINDOW):                                              # static unroll
        d = k - PAD
        shifted = padded[k:k + R, :]                                     # pose[r + d]
        if d == 0:
            sm = sm + cw[k:k + 1, :] * shifted
        else:
            # mask taps that fall outside [0, T) of the row's own sequence
            valid = jnp.logical_and(t + d >= 0, t + d < seq_len)
            sm = sm + cw[k:k + 1, :] * jnp.where(valid, shifted, 0.0)

    # ---- single fused output slab (one DMA stream instead of three) ----
    out_ref[0, :, :] = sm.astype(out_ref.dtype)
    out_ref[1, :, :] = vel.astype(out_ref.dtype)
    out_ref[2, :, :] = acc.astype(out_ref.dtype)


def action_sequence_generator(action_features, raw_poses, params):
    """Pallas equivalent of ActionSequenceGenerator.forward."""
    B, T, H = action_features.shape
    assert raw_poses.shape == (B, T, NPOSE)
    H2 = params["w1"].shape[1]
    BT = B * T

    # fold (B, T) into one row axis; bf16 feed for the MXU matmuls
    af = action_features.reshape(BT, H).astype(jnp.bfloat16)
    poses = raw_poses.reshape(BT, NPOSE).astype(jnp.float32)
    w1 = params["w1"].astype(jnp.bfloat16)
    w2 = params["w2"].astype(jnp.bfloat16)

    # rows per grid step: whole batch elements, ~512 rows per chunk when large
    TARGET_ROWS = 512
    if BT <= TARGET_ROWS:
        bc = B
    else:
        divisors = [d for d in range(1, B + 1)
                    if B % d == 0 and d * T <= TARGET_ROWS and (d * T) % 8 == 0]
        bc = max(divisors) if divisors else B
    R = bc * T
    num_chunks = B // bc

    kernel = functools.partial(_action_kernel, seq_len=T)

    grid_spec = pltpu.PrefetchScalarGridSpec(
        num_scalar_prefetch=0,
        grid=(num_chunks,),
        in_specs=[
            pl.BlockSpec((R, H), lambda i: (i, 0)),            # action features
            pl.BlockSpec((R, NPOSE), lambda i: (i, 0)),        # raw poses
            pl.BlockSpec((H, H2), lambda i: (0, 0)),           # w1
            pl.BlockSpec((1, H2), lambda i: (0, 0)),           # b1
            pl.BlockSpec((H2, NPOSE), lambda i: (0, 0)),       # w2
            pl.BlockSpec((1, NPOSE), lambda i: (0, 0)),        # b2
            pl.BlockSpec((WINDOW, NPOSE), lambda i: (0, 0)),   # depthwise conv w
            pl.BlockSpec((1, NPOSE), lambda i: (0, 0)),        # conv bias
        ],
        out_specs=pl.BlockSpec((3, R, NPOSE), lambda i: (0, i, 0)),
        scratch_shapes=[
            pltpu.VMEM((R + 2 * PAD, NPOSE), jnp.float32),     # padded pose halo
            pltpu.VMEM((R + PAD, NPOSE), jnp.float32),         # shifted velocity
        ],
    )

    fused = pl.pallas_call(
        kernel,
        out_shape=jax.ShapeDtypeStruct((3, BT, NPOSE), jnp.float32),
        grid_spec=grid_spec,
        compiler_params=pltpu.CompilerParams(
            dimension_semantics=("parallel",)),
    )(af, poses, w1, params["b1"], w2, params["b2"],
      params["conv_w"], params["conv_b"])

    fused = fused.reshape(3, B, T, NPOSE)
    return {
        "smooth_poses": fused[0],
        "velocities": fused[1],
        "accelerations": fused[2],
    }


def init_params(hidden_dim, key):
    """Deterministic synthetic parameters (shapes from the module's __init__)."""
    h2 = hidden_dim // 2
    ks = jax.random.split(key, 6)
    return {
        # Linear weights stored (in, out) — transpose of PyTorch's (out, in)
        "w1": jax.random.normal(ks[0], (hidden_dim, h2), jnp.float32) * 0.05,
        "b1": jax.random.normal(ks[1], (1, h2), jnp.float32) * 0.05,
        "w2": jax.random.normal(ks[2], (h2, NPOSE), jnp.float32) * 0.05,
        "b2": jax.random.normal(ks[3], (1, NPOSE), jnp.float32) * 0.05,
        # depthwise Conv1d weight (6, 1, 5) squeezed+transposed to (WINDOW, 6):
        # conv_w[k, c] == pytorch_weight[c, 0, k]
        "conv_w": jax.random.normal(ks[4], (WINDOW, NPOSE), jnp.float32) * 0.2,
        "conv_b": jax.random.normal(ks[5], (1, NPOSE), jnp.float32) * 0.05,
    }


def _reference(af, poses, p):
    """Pure-JAX reference matching the PyTorch forward (mirrors bf16 feed)."""
    afb = af.astype(jnp.bfloat16).astype(jnp.float32)
    w1 = p["w1"].astype(jnp.bfloat16).astype(jnp.float32)
    w2 = p["w2"].astype(jnp.bfloat16).astype(jnp.float32)
    hidden = jnp.maximum(afb @ w1 + p["b1"][0], 0.0)
    hidden = hidden.astype(jnp.bfloat16).astype(jnp.float32)
    vel = hidden @ w2 + p["b2"][0]
    acc = jnp.concatenate(
        [jnp.zeros_like(vel[:, :1]), vel[:, 1:] - vel[:, :-1]], axis=1)
    T = poses.shape[1]
    padded = jnp.pad(poses, ((0, 0), (PAD, PAD), (0, 0)))
    sm = jnp.broadcast_to(p["conv_b"][0], poses.shape)
    for k in range(WINDOW):
        sm = sm + p["conv_w"][k][None, None, :] * padded[:, k:k + T, :]
    return {"smooth_poses": sm, "velocities": vel, "accelerations": acc}


if __name__ == "__main__":
    B, T, HIDDEN = 2, 8, 32          # small shapes consistent with the module
    key = jax.random.PRNGKey(0)
    k_af, k_pose, k_param = jax.random.split(key, 3)

    action_features = jax.random.normal(k_af, (B, T, HIDDEN), jnp.float32)
    raw_poses = jax.random.normal(k_pose, (B, T, NPOSE), jnp.float32)
    params = init_params(HIDDEN, k_param)

    out = action_sequence_generator(action_features, raw_poses, params)
    jax.block_until_ready(out)

    ref = _reference(action_features, raw_poses, params)
    for name in ("smooth_poses", "velocities", "accelerations"):
        assert out[name].shape == (B, T, NPOSE), name
        assert jnp.allclose(out[name], ref[name], atol=1e-4, rtol=1e-4), name

    print("KERNEL_OK")
</pallas_src>

<mosaic_0001>
module attributes {stable_mosaic.version = 11 : i64} {
  func.func @_action_kernel(%arg0: i32, %arg1: memref<16x32xbf16, #tpu.memory_space<vmem>>, %arg2: memref<16x6xf32, #tpu.memory_space<vmem>>, %arg3: memref<32x16xbf16, #tpu.memory_space<vmem>>, %arg4: memref<1x16xf32, #tpu.memory_space<vmem>>, %arg5: memref<16x6xbf16, #tpu.memory_space<vmem>>, %arg6: memref<1x6xf32, #tpu.memory_space<vmem>>, %arg7: memref<5x6xf32, #tpu.memory_space<vmem>>, %arg8: memref<1x6xf32, #tpu.memory_space<vmem>>, %arg9: memref<3x16x6xf32, #tpu.memory_space<vmem>>, %arg10: memref<20x6xf32, #tpu.memory_space<vmem>>, %arg11: memref<18x6xf32, #tpu.memory_space<vmem>>) attributes {dimension_semantics = [#tpu.dimension_semantics<parallel>], iteration_bounds = array<i64: 1>, scalar_prefetch = 0 : i64, scratch_operands = 2 : i64, tpu.core_type = #tpu.core_type<tc>, window_params = [{transform_indices = @transform_0, window_bounds = array<i64: 16, 32>}, {transform_indices = @transform_1, window_bounds = array<i64: 16, 6>}, {pipeline_mode = #tpu.pipeline_mode<synchronous>, transform_indices = @transform_2, window_bounds = array<i64: 32, 16>}, {pipeline_mode = #tpu.pipeline_mode<synchronous>, transform_indices = @transform_3, window_bounds = array<i64: 1, 16>}, {pipeline_mode = #tpu.pipeline_mode<synchronous>, transform_indices = @transform_4, window_bounds = array<i64: 16, 6>}, {pipeline_mode = #tpu.pipeline_mode<synchronous>, transform_indices = @transform_5, window_bounds = array<i64: 1, 6>}, {pipeline_mode = #tpu.pipeline_mode<synchronous>, transform_indices = @transform_6, window_bounds = array<i64: 5, 6>}, {pipeline_mode = #tpu.pipeline_mode<synchronous>, transform_indices = @transform_7, window_bounds = array<i64: 1, 6>}, {transform_indices = @transform_8, window_bounds = array<i64: 3, 16, 6>}]} {
    %c0 = arith.constant 0 : index
    %c0_0 = arith.constant 0 : index
    %0 = vector.load %arg1[%c0, %c0_0] : memref<16x32xbf16, #tpu.memory_space<vmem>>, vector<16x32xbf16>
    %c0_1 = arith.constant 0 : index
    %c0_2 = arith.constant 0 : index
    %1 = vector.load %arg3[%c0_1, %c0_2] : memref<32x16xbf16, #tpu.memory_space<vmem>>, vector<32x16xbf16>
    %cst = arith.constant dense<0.000000e+00> : vector<16x16xf32>
    %2 = tpu.matmul %0, %1, %cst {dimension_numbers = #tpu.dot_dimension_numbers<[1], [0], [0], [1], [0, 0, 1, 1], [], []>} : vector<16x32xbf16>, vector<32x16xbf16>, vector<16x16xf32> -> vector<16x16xf32>
    %c0_3 = arith.constant 0 : index
    %c0_4 = arith.constant 0 : index
    %3 = vector.load %arg4[%c0_3, %c0_4] : memref<1x16xf32, #tpu.memory_space<vmem>>, vector<1x16xf32>
    %4 = vector.broadcast %3 : vector<1x16xf32> to vector<16x16xf32>
    %5 = arith.addf %2, %4 : vector<16x16xf32>
    %cst_5 = arith.constant 0.000000e+00 : f32
    %6 = vector.broadcast %cst_5 : f32 to vector<16x16xf32>
    %7 = arith.maximumf %5, %6 : vector<16x16xf32>
    %8 = arith.truncf %7 : vector<16x16xf32> to vector<16x16xbf16>
    %c0_6 = arith.constant 0 : index
    %c0_7 = arith.constant 0 : index
    %9 = vector.load %arg5[%c0_6, %c0_7] : memref<16x6xbf16, #tpu.memory_space<vmem>>, vector<16x6xbf16>
    %cst_8 = arith.constant dense<0.000000e+00> : vector<16x6xf32>
    %10 = tpu.matmul %8, %9, %cst_8 {dimension_numbers = #tpu.dot_dimension_numbers<[1], [0], [0], [1], [0, 0, 1, 1], [], []>} : vector<16x16xbf16>, vector<16x6xbf16>, vector<16x6xf32> -> vector<16x6xf32>
    %c0_9 = arith.constant 0 : index
    %c0_10 = arith.constant 0 : index
    %11 = vector.load %arg6[%c0_9, %c0_10] : memref<1x6xf32, #tpu.memory_space<vmem>>, vector<1x6xf32>
    %12 = vector.broadcast %11 : vector<1x6xf32> to vector<16x6xf32>
    %13 = arith.addf %10, %12 : vector<16x6xf32>
    %14 = tpu.iota {dimensions = array<i32: 0>} : vector<16x6xi32>
    %c8_i32 = arith.constant 8 : i32
    %c0_i32 = arith.constant 0 : i32
    %15 = arith.cmpi eq, %c8_i32, %c0_i32 : i32
    %c1_i32 = arith.constant 1 : i32
    %16 = arith.select %15, %c1_i32, %c8_i32 : i32
    %17 = vector.broadcast %16 : i32 to vector<16x6xi32>
    %18 = arith.remsi %14, %17 : vector<16x6xi32>
    %c0_i32_11 = arith.constant 0 : i32
    %19 = vector.broadcast %c0_i32_11 : i32 to vector<16x6xi32>
    %20 = arith.cmpi ne, %18, %19 : vector<16x6xi32>
    %c0_i32_12 = arith.constant 0 : i32
    %21 = vector.broadcast %c0_i32_12 : i32 to vector<16x6xi32>
    %22 = arith.cmpi slt, %18, %21 : vector<16x6xi32>
    %c0_i32_13 = arith.constant 0 : i32
    %23 = arith.cmpi slt, %16, %c0_i32_13 : i32
    %24 = vector.broadcast %23 : i1 to vector<16x6xi1>
    %25 = vector.broadcast %24 : vector<16x6xi1> to vector<16x6xi1>
    %26 = arith.xori %22, %25 : vector<16x6xi1>
    %27 = arith.andi %26, %20 : vector<16x6xi1>
    %28 = vector.broadcast %16 : i32 to vector<16x6xi32>
    %29 = arith.addi %18, %28 : vector<16x6xi32>
    %30 = arith.select %27, %29, %18 : vector<16x6xi1>, vector<16x6xi32>
    %cst_14 = arith.constant 0.000000e+00 : f32
    %31 = vector.broadcast %cst_14 : f32 to vector<2x6xf32>
    %c0_15 = arith.constant 0 : index
    %c0_16 = arith.constant 0 : index
    %32 = vector.load %arg11[%c0_15, %c0_16] : memref<18x6xf32, #tpu.memory_space<vmem>>, vector<2x6xf32>
    tpu.vector_store %arg11[%c0_15, %c0_16], %31 {strides = array<i32>} : memref<18x6xf32, #tpu.memory_space<vmem>>, vector<2x6xf32>,
    %c2 = arith.constant 2 : index
    %c0_17 = arith.constant 0 : index
    %33 = vector.load %arg11[%c2, %c0_17] : memref<18x6xf32, #tpu.memory_space<vmem>>, vector<16x6xf32>
    tpu.vector_store %arg11[%c2, %c0_17], %13 {strides = array<i32>} : memref<18x6xf32, #tpu.memory_space<vmem>>, vector<16x6xf32>,
    %c0_18 = arith.constant 0 : index
    %c0_19 = arith.constant 0 : index
    %34 = vector.load %arg11[%c0_18, %c0_19] : memref<18x6xf32, #tpu.memory_space<vmem>>, vector<18x6xf32>
    %35 = vector.extract_strided_slice %34 {offsets = [1, 0], sizes = [16, 6], strides = [1, 1]} : vector<18x6xf32> to vector<16x6xf32>
    %c0_i32_20 = arith.constant 0 : i32
    %36 = vector.broadcast %c0_i32_20 : i32 to vector<16x6xi32>
    %37 = arith.cmpi sgt, %30, %36 : vector<16x6xi32>
    %38 = arith.subf %13, %35 : vector<16x6xf32>
    %cst_21 = arith.constant 0.000000e+00 : f32
    %39 = vector.broadcast %cst_21 : f32 to vector<16x6xf32>
    %40 = arith.select %37, %38, %39 : vector<16x6xi1>, vector<16x6xf32>
    %cst_22 = arith.constant 0.000000e+00 : f32
    %41 = vector.broadcast %cst_22 : f32 to vector<2x6xf32>
    %c0_23 = arith.constant 0 : index
    %c0_24 = arith.constant 0 : index
    %42 = vector.load %arg10[%c0_23, %c0_24] : memref<20x6xf32, #tpu.memory_space<vmem>>, vector<2x6xf32>
    tpu.vector_store %arg10[%c0_23, %c0_24], %41 {strides = array<i32>} : memref<20x6xf32, #tpu.memory_space<vmem>>, vector<2x6xf32>,
    %cst_25 = arith.constant 0.000000e+00 : f32
    %43 = vector.broadcast %cst_25 : f32 to vector<2x6xf32>
    %c18 = arith.constant 18 : index
    %c0_26 = arith.constant 0 : index
    %44 = vector.load %arg10[%c18, %c0_26] : memref<20x6xf32, #tpu.memory_space<vmem>>, vector<2x6xf32>
    tpu.vector_store %arg10[%c18, %c0_26], %43 {strides = array<i32>} : memref<20x6xf32, #tpu.memory_space<vmem>>, vector<2x6xf32>,
    %c0_27 = arith.constant 0 : index
    %c0_28 = arith.constant 0 : index
    %45 = vector.load %arg2[%c0_27, %c0_28] : memref<16x6xf32, #tpu.memory_space<vmem>>, vector<16x6xf32>
    %c2_29 = arith.constant 2 : index
    %c0_30 = arith.constant 0 : index
    %46 = vector.load %arg10[%c2_29, %c0_30] : memref<20x6xf32, #tpu.memory_space<vmem>>, vector<16x6xf32>
    tpu.vector_store %arg10[%c2_29, %c0_30], %45 {strides = array<i32>} : memref<20x6xf32, #tpu.memory_space<vmem>>, vector<16x6xf32>,
    %c0_31 = arith.constant 0 : index
    %c0_32 = arith.constant 0 : index
    %47 = vector.load %arg10[%c0_31, %c0_32] : memref<20x6xf32, #tpu.memory_space<vmem>>, vector<20x6xf32>
    %c0_33 = arith.constant 0 : index
    %c0_34 = arith.constant 0 : index
    %48 = vector.load %arg7[%c0_33, %c0_34] : memref<5x6xf32, #tpu.memory_space<vmem>>, vector<5x6xf32>
    %c0_35 = arith.constant 0 : index
    %c0_36 = arith.constant 0 : index
    %49 = vector.load %arg8[%c0_35, %c0_36] : memref<1x6xf32, #tpu.memory_space<vmem>>, vector<1x6xf32>
    %50 = vector.shape_cast %49 : vector<1x6xf32> to vector<1x6xf32>
    %51 = vector.broadcast %50 : vector<1x6xf32> to vector<16x6xf32>
    %52 = vector.extract_strided_slice %47 {offsets = [0, 0], sizes = [16, 6], strides = [1, 1]} : vector<20x6xf32> to vector<16x6xf32>
    %c-2_i32 = arith.constant -2 : i32
    %53 = vector.broadcast %c-2_i32 : i32 to vector<16x6xi32>
    %54 = arith.addi %30, %53 : vector<16x6xi32>
    %c0_i32_37 = arith.constant 0 : i32
    %55 = vector.broadcast %c0_i32_37 : i32 to vector<16x6xi32>
    %56 = arith.cmpi sge, %54, %55 : vector<16x6xi32>
    %c-2_i32_38 = arith.constant -2 : i32
    %57 = vector.broadcast %c-2_i32_38 : i32 to vector<16x6xi32>
    %58 = arith.addi %30, %57 : vector<16x6xi32>
    %c8_i32_39 = arith.constant 8 : i32
    %59 = vector.broadcast %c8_i32_39 : i32 to vector<16x6xi32>
    %60 = arith.cmpi slt, %58, %59 : vector<16x6xi32>
    %61 = arith.andi %56, %60 : vector<16x6xi1>
    %62 = vector.extract_strided_slice %48 {offsets = [0, 0], sizes = [1, 6], strides = [1, 1]} : vector<5x6xf32> to vector<1x6xf32>
    %cst_40 = arith.constant 0.000000e+00 : f32
    %63 = vector.broadcast %cst_40 : f32 to vector<16x6xf32>
    %64 = arith.select %61, %52, %63 : vector<16x6xi1>, vector<16x6xf32>
    %65 = vector.broadcast %62 : vector<1x6xf32> to vector<16x6xf32>
    %66 = arith.mulf %65, %64 : vector<16x6xf32>
    %67 = arith.addf %51, %66 : vector<16x6xf32>
    %68 = vector.extract_strided_slice %47 {offsets = [1, 0], sizes = [16, 6], strides = [1, 1]} : vector<20x6xf32> to vector<16x6xf32>
    %c-1_i32 = arith.constant -1 : i32
    %69 = vector.broadcast %c-1_i32 : i32 to vector<16x6xi32>
    %70 = arith.addi %30, %69 : vector<16x6xi32>
    %c0_i32_41 = arith.constant 0 : i32
    %71 = vector.broadcast %c0_i32_41 : i32 to vector<16x6xi32>
    %72 = arith.cmpi sge, %70, %71 : vector<16x6xi32>
    %c-1_i32_42 = arith.constant -1 : i32
    %73 = vector.broadcast %c-1_i32_42 : i32 to vector<16x6xi32>
    %74 = arith.addi %30, %73 : vector<16x6xi32>
    %c8_i32_43 = arith.constant 8 : i32
    %75 = vector.broadcast %c8_i32_43 : i32 to vector<16x6xi32>
    %76 = arith.cmpi slt, %74, %75 : vector<16x6xi32>
    %77 = arith.andi %72, %76 : vector<16x6xi1>
    %78 = vector.extract_strided_slice %48 {offsets = [1, 0], sizes = [1, 6], strides = [1, 1]} : vector<5x6xf32> to vector<1x6xf32>
    %cst_44 = arith.constant 0.000000e+00 : f32
    %79 = vector.broadcast %cst_44 : f32 to vector<16x6xf32>
    %80 = arith.select %77, %68, %79 : vector<16x6xi1>, vector<16x6xf32>
    %81 = vector.broadcast %78 : vector<1x6xf32> to vector<16x6xf32>
    %82 = arith.mulf %81, %80 : vector<16x6xf32>
    %83 = arith.addf %67, %82 : vector<16x6xf32>
    %84 = vector.extract_strided_slice %47 {offsets = [2, 0], sizes = [16, 6], strides = [1, 1]} : vector<20x6xf32> to vector<16x6xf32>
    %85 = vector.extract_strided_slice %48 {offsets = [2, 0], sizes = [1, 6], strides = [1, 1]} : vector<5x6xf32> to vector<1x6xf32>
    %86 = vector.broadcast %85 : vector<1x6xf32> to vector<16x6xf32>
    %87 = arith.mulf %86, %84 : vector<16x6xf32>
    %88 = arith.addf %83, %87 : vector<16x6xf32>
    %89 = vector.extract_strided_slice %47 {offsets = [3, 0], sizes = [16, 6], strides = [1, 1]} : vector<20x6xf32> to vector<16x6xf32>
    %c1_i32_45 = arith.constant 1 : i32
    %90 = vector.broadcast %c1_i32_45 : i32 to vector<16x6xi32>
    %91 = arith.addi %30, %90 : vector<16x6xi32>
    %c0_i32_46 = arith.constant 0 : i32
    %92 = vector.broadcast %c0_i32_46 : i32 to vector<16x6xi32>
    %93 = arith.cmpi sge, %91, %92 : vector<16x6xi32>
    %c1_i32_47 = arith.constant 1 : i32
    %94 = vector.broadcast %c1_i32_47 : i32 to vector<16x6xi32>
    %95 = arith.addi %30, %94 : vector<16x6xi32>
    %c8_i32_48 = arith.constant 8 : i32
    %96 = vector.broadcast %c8_i32_48 : i32 to vector<16x6xi32>
    %97 = arith.cmpi slt, %95, %96 : vector<16x6xi32>
    %98 = arith.andi %93, %97 : vector<16x6xi1>
    %99 = vector.extract_strided_slice %48 {offsets = [3, 0], sizes = [1, 6], strides = [1, 1]} : vector<5x6xf32> to vector<1x6xf32>
    %cst_49 = arith.constant 0.000000e+00 : f32
    %100 = vector.broadcast %cst_49 : f32 to vector<16x6xf32>
    %101 = arith.select %98, %89, %100 : vector<16x6xi1>, vector<16x6xf32>
    %102 = vector.broadcast %99 : vector<1x6xf32> to vector<16x6xf32>
    %103 = arith.mulf %102, %101 : vector<16x6xf32>
    %104 = arith.addf %88, %103 : vector<16x6xf32>
    %105 = vector.extract_strided_slice %47 {offsets = [4, 0], sizes = [16, 6], strides = [1, 1]} : vector<20x6xf32> to vector<16x6xf32>
    %c2_i32 = arith.constant 2 : i32
    %106 = vector.broadcast %c2_i32 : i32 to vector<16x6xi32>
    %107 = arith.addi %30, %106 : vector<16x6xi32>
    %c0_i32_50 = arith.constant 0 : i32
    %108 = vector.broadcast %c0_i32_50 : i32 to vector<16x6xi32>
    %109 = arith.cmpi sge, %107, %108 : vector<16x6xi32>
    %c2_i32_51 = arith.constant 2 : i32
    %110 = vector.broadcast %c2_i32_51 : i32 to vector<16x6xi32>
    %111 = arith.addi %30, %110 : vector<16x6xi32>
    %c8_i32_52 = arith.constant 8 : i32
    %112 = vector.broadcast %c8_i32_52 : i32 to vector<16x6xi32>
    %113 = arith.cmpi slt, %111, %112 : vector<16x6xi32>
    %114 = arith.andi %109, %113 : vector<16x6xi1>
    %115 = vector.extract_strided_slice %48 {offsets = [4, 0], sizes = [1, 6], strides = [1, 1]} : vector<5x6xf32> to vector<1x6xf32>
    %cst_53 = arith.constant 0.000000e+00 : f32
    %116 = vector.broadcast %cst_53 : f32 to vector<16x6xf32>
    %117 = arith.select %114, %105, %116 : vector<16x6xi1>, vector<16x6xf32>
    %118 = vector.broadcast %115 : vector<1x6xf32> to vector<16x6xf32>
    %119 = arith.mulf %118, %117 : vector<16x6xf32>
    %120 = arith.addf %104, %119 : vector<16x6xf32>
    %c0_54 = arith.constant 0 : index
    %c0_55 = arith.constant 0 : index
    %c0_56 = arith.constant 0 : index
    %121 = vector.load %arg9[%c0_54, %c0_55, %c0_56] : memref<3x16x6xf32, #tpu.memory_space<vmem>>, vector<1x16x6xf32>
    %122 = vector.shape_cast %121 : vector<1x16x6xf32> to vector<16x6xf32>
    %123 = vector.shape_cast %120 : vector<16x6xf32> to vector<1x16x6xf32>
    tpu.vector_store %arg9[%c0_54, %c0_55, %c0_56], %123 {strides = array<i32>} : memref<3x16x6xf32, #tpu.memory_space<vmem>>, vector<1x16x6xf32>,
    %c1 = arith.constant 1 : index
    %c0_57 = arith.constant 0 : index
    %c0_58 = arith.constant 0 : index
    %124 = vector.load %arg9[%c1, %c0_57, %c0_58] : memref<3x16x6xf32, #tpu.memory_space<vmem>>, vector<1x16x6xf32>
    %125 = vector.shape_cast %124 : vector<1x16x6xf32> to vector<16x6xf32>
    %126 = vector.shape_cast %13 : vector<16x6xf32> to vector<1x16x6xf32>
    tpu.vector_store %arg9[%c1, %c0_57, %c0_58], %126 {strides = array<i32>} : memref<3x16x6xf32, #tpu.memory_space<vmem>>, vector<1x16x6xf32>,
    %c2_59 = arith.constant 2 : index
    %c0_60 = arith.constant 0 : index
    %c0_61 = arith.constant 0 : index
    %127 = vector.load %arg9[%c2_59, %c0_60, %c0_61] : memref<3x16x6xf32, #tpu.memory_space<vmem>>, vector<1x16x6xf32>
    %128 = vector.shape_cast %127 : vector<1x16x6xf32> to vector<16x6xf32>
    %129 = vector.shape_cast %40 : vector<16x6xf32> to vector<1x16x6xf32>
    tpu.vector_store %arg9[%c2_59, %c0_60, %c0_61], %129 {strides = array<i32>} : memref<3x16x6xf32, #tpu.memory_space<vmem>>, vector<1x16x6xf32>,
    return
  }
  func.func @transform_0(%arg0: i32) -> (i32, i32) {
    %c0_i32 = arith.constant 0 : i32
    %c0_i32_0 = arith.constant 0 : i32
    return %arg0, %c0_i32 : i32, i32
  }
  func.func @transform_1(%arg0: i32) -> (i32, i32) {
    %c0_i32 = arith.constant 0 : i32
    %c0_i32_0 = arith.constant 0 : i32
    return %arg0, %c0_i32 : i32, i32
  }
  func.func @transform_2(%arg0: i32) -> (i32, i32) {
    %c0_i32 = arith.constant 0 : i32
    %c0_i32_0 = arith.constant 0 : i32
    %c0_i32_1 = arith.constant 0 : i32
    return %c0_i32, %c0_i32_0 : i32, i32
  }
  func.func @transform_3(%arg0: i32) -> (i32, i32) {
    %c0_i32 = arith.constant 0 : i32
    %c0_i32_0 = arith.constant 0 : i32
    %c0_i32_1 = arith.constant 0 : i32
    return %c0_i32, %c0_i32_0 : i32, i32
  }
  func.func @transform_4(%arg0: i32) -> (i32, i32) {
    %c0_i32 = arith.constant 0 : i32
    %c0_i32_0 = arith.constant 0 : i32
    %c0_i32_1 = arith.constant 0 : i32
    return %c0_i32, %c0_i32_0 : i32, i32
  }
  func.func @transform_5(%arg0: i32) -> (i32, i32) {
    %c0_i32 = arith.constant 0 : i32
    %c0_i32_0 = arith.constant 0 : i32
    %c0_i32_1 = arith.constant 0 : i32
    return %c0_i32, %c0_i32_0 : i32, i32
  }
  func.func @transform_6(%arg0: i32) -> (i32, i32) {
    %c0_i32 = arith.constant 0 : i32
    %c0_i32_0 = arith.constant 0 : i32
    %c0_i32_1 = arith.constant 0 : i32
    return %c0_i32, %c0_i32_0 : i32, i32
  }
  func.func @transform_7(%arg0: i32) -> (i32, i32) {
    %c0_i32 = arith.constant 0 : i32
    %c0_i32_0 = arith.constant 0 : i32
    %c0_i32_1 = arith.constant 0 : i32
    return %c0_i32, %c0_i32_0 : i32, i32
  }
  func.func @transform_8(%arg0: i32) -> (i32, i32, i32) {
    %c0_i32 = arith.constant 0 : i32
    %c0_i32_0 = arith.constant 0 : i32
    %c0_i32_1 = arith.constant 0 : i32
    return %c0_i32, %arg0, %c0_i32_0 : i32, i32, i32
  }
}

</mosaic_0001>

<bundles_post_ra>
// kernel: tpu_custom_call.1
= control target key start
LH: loop header
LB: loop body
LE: loop exit
PB: predicated region body
PF: predicated region fallthrough
CT: control target
= control target key end

     0   :  { %vm195_vm0 = vcmask 41984   ;;  %v405_v0 = vmov 0.0   ;;  %vm406_vm1 = vmmov 0   ;;  %vm60_vm2 = vcmask 261120   ;;  %s568_s2 = inlined_call_operand.vmem [shape: bf16[32,16], index: 2, kind: input, shape index: {}]   ;;  %s569_s0 = inlined_call_operand.vmem [shape: bf16[16,32], index: 0, kind: input, shape index: {}]   ;;  %s570_s4 = inlined_call_operand.vmem [shape: bf16[16,6], index: 4, kind: input, shape index: {}]   ;;  %s571_s3 = inlined_call_operand.vmem [shape: f32[1,16], index: 3, kind: input, shape index: {}]   ;;  %s572_s1 = inlined_call_operand.vmem [shape: f32[16,6], index: 1, kind: input, shape index: {}]   ;;  %s573_s6 = inlined_call_operand.vmem [shape: f32[5,6], index: 6, kind: input, shape index: {}]   ;;  %s574_s7 = inlined_call_operand.vmem [shape: f32[1,6], index: 7, kind: input, shape index: {}]   ;;  %s575_s8 = inlined_call_operand.vmem [shape: f32[3,16,6], index: 8, kind: output, shape index: {}]   ;;  %s576_s5 = inlined_call_operand.vmem [shape: f32[1,6], index: 5, kind: input, shape index: {}]  }
   0x1   :  { %385 = vmatprep.subr.bf16.mxu0 %v405_v0  ;;  %196 = vst.msk [vmem:[#allocation3] sm:$0x3] %vm195_vm0, %v405_v0  ;;  %220 = vst.msk [vmem:[#allocation2] sm:$0x3] %vm195_vm0, %v405_v0  ;;  %v401_v1 = vld [vmem:[%s568_s2] sm:$0xff]   ;;  %389 = vmatprep.mubr.msk.bf16.mxu0 %vm406_vm1, %v405_v0  ;;  %v402_v2 = vld [vmem:[%s568_s2 + $0x8] sm:$0xff]   ;;  %v168_v15 = vlaneseq }
   0x2   :  { %221 = vst.msk [vmem:[#allocation2 + $0x12] sm:$0x3] %vm195_vm0, %v405_v0  ;;  %393 = vmatprep.subr.bf16.mxu1 %v405_v0  ;;  %395 = vmatprep.mubr.msk.bf16.mxu1 %vm406_vm1, %v405_v0  ;;  %v403_v3 = vld [vmem:[%s569_s0] sm:$0xff]   ;;  %vm123_vm3 = vcmask 130048   ;;  %vm197_vm4 = vcmask 48128   ;;  %v223_v17 = vld [vmem:[%s572_s1 + $0x8] sm:$0xff] }
   0x3   :  { %386 = vmatpush3.bf16.msra.mxu0 %v401_v1  ;;  %v404_v4 = vld [vmem:[%s570_s4] sm:$0xff]   ;;  %v474_v18 = vshrl.u32 %v168_v15, 7  ;;  %225 = vst.msk [vmem:[#allocation2 + $0xa] sm:$0xff] %vm197_vm4, %v223_v17  ;;  %vm208_vm7 = vcmask 1046528   ;;  %vm293_vm10 = vcmask 1045504   ;;  %vm311_vm13 = vcmask 1044480  }
   0x4   :  { %387 = vmatprep.subr.bf16.mxu0 %v405_v0  ;;  %394 = vmatpush3.bf16.msra.mxu1 %v404_v4  ;;  %v367_v5 = vld [vmem:[%s571_s3] ss:$0 sm:$0xff]  ;;  %vm337_vm15 = vcmask 1043456  }
   0x5   :  { %v222_v16 = vld [vmem:[%s572_s1] sm:$0xff]  ;;  %v170_v19 = vadd.s32 8, %v474_v18  ;;  %v479_v20 = vand.u32 7, %v474_v18  ;;  %v249_v24 = vsub.s32 0, %v474_v18  ;;  %v285_v28 = vsub.s32 2, %v474_v18 }
   0x6   :  { %224 = vst.msk [vmem:[#allocation2 + $0x2] sm:$0xff] %vm197_vm4, %v222_v16  ;;  %v496_v29 = vld [vmem:[%s573_s6] sm:$0x1f]  ;;  %v277_v41 = vsub.s32 1, %v474_v18 }
   0x7   :  { %388 = vmatpush3.bf16.msra.mxu0 %v402_v2  ;;  %v481_v21 = vand.u32 7, %v170_v19  ;;  %v237_v22 = vadd.s32 4294967294, %v479_v20  ;;  %v255_v30 = vadd.s32 4294967295, %v479_v20  ;;  %v250_v34 = vrot.slane %v496_v29, %v249_v24  ;;  %v375_v37 = vld [vmem:[%s574_s7] ss:$0 sm:$0xff] }
   0x8   :  { %v286_v43 = vrot.slane %v496_v29, %v285_v28  ;;  %v303_v44 = vadd.s32 1, %v479_v20  ;;  %v278_v51 = vrot.slane %v496_v29, %v277_v41  ;;  %v349_v19 = vsub.s32 4, %v474_v18 }
   0x9   :  { %v238_v23 = vadd.s32 4294967294, %v481_v21  ;;  %vm239_vm5 = vcmp.ge.s32.totalorder %v237_v22, 0  ;;  %v256_v31 = vadd.s32 4294967295, %v481_v21  ;;  %vm257_vm8 = vcmp.ge.s32.totalorder %v255_v30, 0 }
   0xa   :  { %390 = vmatmul.mubr.msk.bf16.vlgmr.msra.gmra.mrb[0].mxu0 %vm60_vm2, %v403_v3  ;;  %v490_v27 = vld [vmem:[#allocation2 + $0x10] sm:$0xf]  ;;  %v304_v45 = vadd.s32 1, %v481_v21  ;;  %vm307_vm11 = vcmp.lt.s32.totalorder %v303_v44, 8  ;;  %v323_v3 = vsub.s32 3, %v474_v18  ;;  %vm203_vm1 = vcmp.gt.s32.totalorder %v479_v20, 0 }
   0xb   :  { %vm240_vm6 = vcmp.ge.s32.totalorder %v238_v23, 0  ;;  %vm258_vm9 = vcmp.ge.s32.totalorder %v256_v31, 0  ;;  %v269_v40 = vrot.slane %v490_v27, 1  ;;  %v289_v54 = vmul.f32 %v286_v43, %v490_v27  ;;  %v372_v18 = vld [vmem:[%s576_s5] ss:$0 sm:$0xff] }
   0xc   :  { %vm308_vm12 = vcmp.lt.s32.totalorder %v304_v45, 8  ;;  %v315_v2 = vrot.slane %v490_v27, 3  ;;  %v341_v17 = vrot.slane %v490_v27, 4  ;;  %v350_v31 = vrot.slane %v496_v29, %v349_v19 }
   0xd   :  { %v486_v25 = vld [vmem:[#allocation2] sm:$0xff]  ;;  %v488_v26 = vld [vmem:[#allocation2 + $0x8] sm:$0xff]  ;;  %v297_v59 = vrot.slane %v289_v54, 2  ;;  %vm204_vm2 = vcmp.gt.s32.totalorder %v481_v21, 0 }
   0xe   :  { %v245_v32 = vsel %vm239_vm5, %v486_v25, 0.0  ;;  %v246_v33 = vsel %vm240_vm6, %v488_v26, 0.0  ;;  %v266_v35 = vrot.slane %v486_v25, 1  ;;  %v267_v36 = vrot.slane %v488_v26, 1 }
   0xf   :  { %v251_v38 = vmul.f32 %v250_v34, %v245_v32  ;;  %v252_v39 = vmul.f32 %v250_v34, %v246_v33  ;;  %v287_v52 = vmul.f32 %v286_v43, %v486_v25  ;;  %v288_v53 = vmul.f32 %v286_v43, %v488_v26 }
  0x10   :  { %v268_v42 = vsel %vm208_vm7, %v266_v35, %v267_v36  ;;  %v270_v48 = vsel %vm208_vm7, %v267_v36, %v269_v40  ;;  %v312_v63 = vrot.slane %v486_v25, 3  ;;  %v313_v1 = vrot.slane %v488_v26, 3 }
  0x11   :  { %v253_v46 = vadd.f32 %v375_v37, %v251_v38  ;;  %v254_v47 = vadd.f32 %v375_v37, %v252_v39  ;;  %v273_v49 = vsel %vm257_vm8, %v268_v42, 0.0  ;;  %v274_v50 = vsel %vm258_vm9, %v270_v48, 0.0 }
  0x12   :  { %v279_v55 = vmul.f32 %v278_v51, %v273_v49  ;;  %v280_v56 = vmul.f32 %v278_v51, %v274_v50  ;;  %v294_v57 = vrot.slane %v287_v52, 2  ;;  %v295_v58 = vrot.slane %v288_v53, 2 }
  0x13   :  { %v338_v15 = vrot.slane %v486_v25, 4  ;;  %v339_v16 = vrot.slane %v488_v26, 4 }
  0x14   :  { %v281_v60 = vadd.f32 %v279_v55, %v253_v46  ;;  %v282_v61 = vadd.f32 %v280_v56, %v254_v47  ;;  %v296_v62 = vsel %vm293_vm10, %v294_v57, %v295_v58  ;;  %v298_v0 = vsel %vm293_vm10, %v295_v58, %v297_v59 }
  0x15   :  { %v340_v23 = vsel %vm337_vm15, %v338_v15, %v339_v16  ;;  %v342_v28 = vsel %vm337_vm15, %v339_v16, %v341_v17 }
  0x16   :  { %v301_v4 = vadd.f32 %v296_v62, %v281_v60 }
  0xdd   :  { %v98_v6 = vpop.f32.mrb[0].mxu0 }
  0xde   :  { %v99_v7 = vadd.f32 %v367_v5, %v98_v6  ;;  %v391_v8 = vpop.f32.mrb[1].mxu0  ;;  %v330_v6 = vadd.s32 2, %v481_v21 }
  0xdf   :  { %v101_v9 = vpop.f32.mrb[2].mxu0  ;;  %v314_v8 = vsel %vm311_vm13, %v312_v63, %v313_v1 }
  0xe0   :  { %v102_v10 = vadd.f32 %v367_v5, %v101_v9  ;;  %v392_v11 = vpop.f32.mrb[3].mxu0  ;;  %v105_v12 = vmax.f32 %v99_v7, 0.0  ;;  %v329_v5 = vadd.s32 2, %v479_v20  ;;  %v302_v7 = vadd.f32 %v298_v0, %v282_v61 }
  0xe1   :  { %v316_v9 = vsel %vm311_vm13, %v313_v1, %v315_v2  ;;  %v319_v11 = vsel %vm307_vm11, %v314_v8, 0.0  ;;  %vm334_vm0 = vcmp.lt.s32.totalorder %v330_v6, 8 }
  0xe2   :  { %v106_v13 = vmax.f32 %v102_v10, 0.0  ;;  %v324_v10 = vrot.slane %v496_v29, %v323_v3  ;;  %vm333_vm14 = vcmp.lt.s32.totalorder %v329_v5, 8  ;;  %v346_v32 = vsel %vm334_vm0, %v342_v28, 0.0 }
  0xe3   :  { %v345_v30 = vsel %vm333_vm14, %v340_v23, 0.0  ;;  %v352_v34 = vmul.f32 %v350_v31, %v346_v32 }
  0xe4   :  { %v107_v14 = vpack.c.bf16 %v106_v13, %v105_v12  ;;  %v320_v12 = vsel %vm308_vm12, %v316_v9, 0.0  ;;  %v325_v13 = vmul.f32 %v324_v10, %v319_v11  ;;  %v351_v33 = vmul.f32 %v350_v31, %v345_v30 }
  0xe6   :  { %396 = vmatmul.mubr.msk.bf16.vlgmr.msra.gmra.mrb[0].mxu1 %vm123_vm3, %v107_v14  ;;  %v326_v14 = vmul.f32 %v324_v10, %v320_v12  ;;  %v327_v22 = vadd.f32 %v325_v13, %v301_v4 }
  0xe8   :  { %v328_v24 = vadd.f32 %v326_v14, %v302_v7  ;;  %v353_v35 = vadd.f32 %v351_v33, %v327_v22 }
  0xea   :  { %v354_v36 = vadd.f32 %v352_v34, %v328_v24  ;;  %355 = vst.msk [vmem:[%s575_s8] sm:$0xff] %vm197_vm4, %v353_v35 }
  0xec   :  { %356 = vst.msk [vmem:[%s575_s8 + $0x8] sm:$0xff] %vm197_vm4, %v354_v36 }
 0x1b9   :  { %v161_v25 = vpop.f32.mrb[0].mxu1 }
 0x1ba   :  { %v162_v26 = vadd.f32 %v372_v18, %v161_v25  ;;  %v397_v27 = vpop.f32.mrb[1].mxu1 }
 0x1bb   :  { %v164_v29 = vpop.f32.mrb[2].mxu1 }
 0x1bc   :  { %198 = vst.msk [vmem:[#allocation3 + $0x2] sm:$0xff] %vm197_vm4, %v162_v26  ;;  %376 = vst.msk [vmem:[%s575_s8 + $0x10] sm:$0xff] %vm197_vm4, %v162_v26  ;;  %v165_v37 = vadd.f32 %v372_v18, %v164_v29  ;;  %v398_v38 = vpop.f32.mrb[3].mxu1 }
 0x1be   :  { %199 = vst.msk [vmem:[#allocation3 + $0xa] sm:$0xff] %vm197_vm4, %v165_v37  ;;  %377 = vst.msk [vmem:[%s575_s8 + $0x18] sm:$0xff] %vm197_vm4, %v165_v37 }
 0x1c3   :  { %v200_v39 = vld [vmem:[#allocation3] sm:$0xff] }
 0x1c4   :  { %v209_v42 = vrot.slane %v200_v39, 1 }
 0x1c5   :  { %v201_v40 = vld [vmem:[#allocation3 + $0x8] sm:$0xff]  ;;  %v202_v41 = vld [vmem:[#allocation3 + $0x10] sm:$0x3] }
 0x1c6   :  { %v210_v43 = vrot.slane %v201_v40, 1  ;;  %v212_v44 = vrot.slane %v202_v41, 1 }
 0x1c8   :  { %v211_v45 = vsel %vm208_vm7, %v209_v42, %v210_v43  ;;  %v213_v46 = vsel %vm208_vm7, %v210_v43, %v212_v44 }
 0x1c9   :  { %v216_v47 = vsub.f32 %v162_v26, %v211_v45  ;;  %v217_v48 = vsub.f32 %v165_v37, %v213_v46 }
 0x1cb   :  { %v218_v49 = vsel %vm203_vm1, %v216_v47, 0.0  ;;  %v219_v50 = vsel %vm204_vm2, %v217_v48, 0.0 }
 0x1cc   :  { %378 = vst.msk [vmem:[%s575_s8 + $0x20] sm:$0xff] %vm197_vm4, %v218_v49  ;;  %379 = vst.msk [vmem:[%s575_s8 + $0x28] sm:$0xff] %vm197_vm4, %v219_v50 }

</bundles_post_ra>
